<compile_context>
chip_gen: v6e
topology: v6e:2x2x1
jax: 0.10.0
libtpu: 0.0.40
codegen_flags: <defaults>
</compile_context>

<pallas_src>
import math

import jax
import jax.numpy as jnp
from jax.experimental import pallas as pl
from jax.experimental.pallas import tpu as pltpu


def _fusion_kernel(emb_ref, w_ref, out_ref):
    # Elementwise scale; the weight row [1, Fw] sublane-broadcasts over the
    # node (row) axis of the embedding tile. Single VPU pass, mem-bound.
    out_ref[...] = emb_ref[...] * w_ref[...]


def _choose_fold(n_rows, feat, target_lanes=1024, max_lanes=8192):
    """Pick k (dividing n_rows) so the folded last dim k*feat is a multiple of
    128, preferring k*feat >= target_lanes. Returns 1 if no valid fold exists
    (then the full-array-dim exception to the (8,128) rule applies)."""
    if feat % 128 == 0 and feat >= target_lanes:
        return 1
    k0 = 128 // math.gcd(feat, 128)          # smallest k making k*feat % 128 == 0
    best = 1 if feat % 128 == 0 else None
    k = k0
    while k <= n_rows and k * feat <= max_lanes:
        if n_rows % k == 0:
            best = k
            if k * feat >= target_lanes:
                break
        k += k0
    return best if best is not None else 1


def node_prompt_fusion_forward(embedding, con_weight, sem_weight, lamb=1.0,
                               row_tile=None):
    """embedding: [N, 2*D], con_weight/sem_weight: [1, D]."""
    N, F = embedding.shape
    dtype = embedding.dtype
    itemsize = jnp.dtype(dtype).itemsize

    # Fused weight row; cast once to the streaming dtype.
    weight = jnp.concatenate([con_weight, sem_weight * lamb], axis=1).astype(dtype)
    assert weight.shape == (1, F)

    # --- lane-dense layout: fold k rows into lanes (row-major reshape, free) ---
    k = _choose_fold(N, F)
    M, Fw = N // k, k * F
    emb2 = embedding.reshape(M, Fw) if k > 1 else embedding
    w2 = jnp.tile(weight, (1, k)) if k > 1 else weight

    # --- VMEM-budgeted row tile (~2 MiB per tile buffer) ---
    # Double-buffered input + output tiles plus the resident weight row stay
    # well under the scoped defaults (16 MiB v5e / 32 MiB v6e,v7x) while still
    # giving enough grid steps to pipeline DMA with compute.
    sub = max(8, 32 // itemsize)              # sublane multiple: 8 f32 / 16 bf16
    if row_tile is None:
        budget = 2 * 1024 * 1024
        rows = max(sub, (budget // max(1, Fw * itemsize)) // sub * sub)
        row_tile = min(rows, M)
    else:
        row_tile = min(max(sub, (row_tile // sub) * sub), M)  # folded-layout rows

    grid = (pl.cdiv(M, row_tile),)

    out = pl.pallas_call(
        _fusion_kernel,
        out_shape=jax.ShapeDtypeStruct((M, Fw), dtype),
        grid_spec=pltpu.PrefetchScalarGridSpec(
            num_scalar_prefetch=0,
            grid=grid,
            in_specs=[
                pl.BlockSpec((row_tile, Fw), lambda i: (i, 0)),  # embedding tile
                pl.BlockSpec((1, Fw), lambda i: (0, 0)),         # weight, resident
            ],
            out_specs=pl.BlockSpec((row_tile, Fw), lambda i: (i, 0)),
        ),
        compiler_params=pltpu.CompilerParams(
            dimension_semantics=("parallel",),
            vmem_limit_bytes=32 * 1024 * 1024,
        ),
        cost_estimate=pl.CostEstimate(
            flops=N * F,
            transcendentals=0,
            bytes_accessed=2 * N * F * itemsize + F * itemsize,
        ),
    )(emb2, w2)

    return out.reshape(N, F) if k > 1 else out


if __name__ == "__main__":
    key = jax.random.PRNGKey(0)
    k_emb, k_con, k_sem = jax.random.split(key, 3)

    # --- small test, shapes consistent with the module ---
    input_dim = 16          # D
    num_nodes = 8           # N
    lamb = 0.5

    embedding = jax.random.normal(k_emb, (num_nodes, 2 * input_dim), jnp.float32)
    # reset_parameters() would set ones; use deterministic random values so the
    # check is non-trivial.
    con_weight = jax.random.normal(k_con, (1, input_dim), jnp.float32)
    sem_weight = jax.random.normal(k_sem, (1, input_dim), jnp.float32)

    out = node_prompt_fusion_forward(embedding, con_weight, sem_weight, lamb=lamb)
    out = jax.block_until_ready(out)

    ref = embedding * jnp.concatenate([con_weight, sem_weight * lamb], axis=1)
    assert out.shape == embedding.shape
    assert jnp.allclose(out, ref, atol=1e-6, rtol=1e-6)

    # --- second check: lane folding + multi-block grid + bf16 streaming path ---
    k2_emb, k2_con, k2_sem = jax.random.split(jax.random.PRNGKey(1), 3)
    D2, N2 = 64, 2048
    emb_b = jax.random.normal(k2_emb, (N2, 2 * D2), jnp.bfloat16)
    con_b = jax.random.normal(k2_con, (1, D2), jnp.float32)
    sem_b = jax.random.normal(k2_sem, (1, D2), jnp.float32)

    out_b = node_prompt_fusion_forward(emb_b, con_b, sem_b, lamb=lamb, row_tile=64)
    out_b = jax.block_until_ready(out_b)

    w_b = jnp.concatenate([con_b, sem_b * lamb], axis=1).astype(jnp.bfloat16)
    ref_b = emb_b.astype(jnp.float32) * w_b.astype(jnp.float32)
    assert out_b.shape == emb_b.shape
    assert jnp.allclose(out_b.astype(jnp.float32), ref_b, atol=2e-2, rtol=2e-2)

    print("KERNEL_OK")
</pallas_src>

<mosaic_0001>
module attributes {stable_mosaic.version = 11 : i64} {
  func.func @_fusion_kernel(%arg0: i32, %arg1: memref<1x256xf32, #tpu.memory_space<vmem>>, %arg2: memref<1x256xf32, #tpu.memory_space<vmem>>, %arg3: memref<1x256xf32, #tpu.memory_space<vmem>>) attributes {dimension_semantics = [#tpu.dimension_semantics<parallel>], iteration_bounds = array<i64: 1>, scalar_prefetch = 0 : i64, scratch_operands = 0 : i64, tpu.core_type = #tpu.core_type<tc>, window_params = [{transform_indices = @transform_0, window_bounds = array<i64: 1, 256>}, {pipeline_mode = #tpu.pipeline_mode<synchronous>, transform_indices = @transform_1, window_bounds = array<i64: 1, 256>}, {transform_indices = @transform_2, window_bounds = array<i64: 1, 256>}]} {
    %c0 = arith.constant 0 : index
    %c0_0 = arith.constant 0 : index
    %0 = vector.load %arg1[%c0, %c0_0] : memref<1x256xf32, #tpu.memory_space<vmem>>, vector<1x256xf32>
    %c0_1 = arith.constant 0 : index
    %c0_2 = arith.constant 0 : index
    %1 = vector.load %arg2[%c0_1, %c0_2] : memref<1x256xf32, #tpu.memory_space<vmem>>, vector<1x256xf32>
    %2 = arith.mulf %0, %1 : vector<1x256xf32>
    %c0_3 = arith.constant 0 : index
    %c0_4 = arith.constant 0 : index
    %3 = vector.load %arg3[%c0_3, %c0_4] : memref<1x256xf32, #tpu.memory_space<vmem>>, vector<1x256xf32>
    tpu.vector_store %arg3[%c0_3, %c0_4], %2 {strides = array<i32>} : memref<1x256xf32, #tpu.memory_space<vmem>>, vector<1x256xf32>,
    return
  }
  func.func @transform_0(%arg0: i32) -> (i32, i32) {
    %c0_i32 = arith.constant 0 : i32
    %c0_i32_0 = arith.constant 0 : i32
    return %arg0, %c0_i32 : i32, i32
  }
  func.func @transform_1(%arg0: i32) -> (i32, i32) {
    %c0_i32 = arith.constant 0 : i32
    %c0_i32_0 = arith.constant 0 : i32
    %c0_i32_1 = arith.constant 0 : i32
    return %c0_i32, %c0_i32_0 : i32, i32
  }
  func.func @transform_2(%arg0: i32) -> (i32, i32) {
    %c0_i32 = arith.constant 0 : i32
    %c0_i32_0 = arith.constant 0 : i32
    return %arg0, %c0_i32 : i32, i32
  }
}

</mosaic_0001>

<bundles_post_ra>
// kernel: tpu_custom_call.1
= control target key start
LH: loop header
LB: loop body
LE: loop exit
PB: predicated region body
PF: predicated region fallthrough
CT: control target
= control target key end

     0   :  { %7 = vsyncpa [#allocation3], 0  ;;  %s156_s0 = inlined_call_operand.hbm [shape: f32[1,256], index: 0, kind: input, shape index: {}]   ;;  %s157_s1 = inlined_call_operand.hbm [shape: f32[1,256], index: 1, kind: input, shape index: {}]   ;;  %s158_s2 = inlined_call_operand.hbm [shape: f32[1,256], index: 2, kind: output, shape index: {}]  }
   0x1   :  { %8 = vsyncpa [#allocation6], 0 }
   0x2   :  { %9 = vsyncpa [#allocation4], 0  ;;  %s129_s9 = smov [#allocation2]   ;;  %s130_s11 = smov [#allocation5]  }
   0x3   :  { %s16_s10 = sshll.u32 %s129_s9, 4  ;;  %s26_s12 = sshll.u32 %s130_s11, 4  ;;  %s17_s10 = int_to_ptr.vmem [resolvable:$true] %s16_s10  ;;  %s27_s12 = int_to_ptr.vmem [resolvable:$true] %s26_s12 }
   0x4   :  { %s71_s13 = scalar_lea.vmem %s17_s10, 32  ;;  %p76_p1 = scmp.lt.s32.totalorder %s17_s10, %s17_s10 }
   0x5   :  { %p72_p0 = scmp.ne.s32.totalorder %s17_s10, %s71_s13  ;;  %p77_p2 = scmp.lt.s32.totalorder %s71_s13, %s71_s13 }
   0x7   :  { %p78_p3 = por %p77_p2, %p76_p1 }
   0x9   :  { %p79_p4 = pnand %p78_p3, %p72_p0 }
   0xb   :  { %82 = shalt.err (!%p79_p4)
}
   0xc   :  { %19 = dma.hbm_to_vmem [thread:$0]  %s156_s0, 32, %s17_s10, [#allocation3]  }
   0xd   :  { %s91_s16 = scalar_lea.vmem %s27_s12, 32  ;;  %p96_p6 = scmp.lt.s32.totalorder %s27_s12, %s27_s12 }
   0xe   :  { %p92_p5 = scmp.ne.s32.totalorder %s27_s12, %s91_s16  ;;  %p97_p7 = scmp.lt.s32.totalorder %s91_s16, %s91_s16 }
  0x10   :  { %p98_p8 = por %p97_p7, %p96_p6 }
  0x12   :  { %p99_p9 = pnand %p98_p8, %p92_p5 }
  0x14   :  { %102 = shalt.err (!%p99_p9)
}
  0x15   :  { %29 = dma.hbm_to_vmem [thread:$0]  %s157_s1, 32, %s27_s12, [#allocation6]  }
  0x16   :  { %123 = dma.done.wait [#allocation3], 32  }
  0x17   :  { %124 = vsyncadd [#allocation3], 4294967264 }
  0x18   :  { %125 = dma.done.wait [#allocation6], 32  }
  0x19   :  { %126 = vsyncadd [#allocation6], 4294967264  ;;  %v39_v0 = vlaneseq  ;;  %s131_s19 = smov [#allocation7]   ;;  %v36_v1 = vld [vmem:[#allocation2] sm:$0x3] }
  0x1a   :  { %s50_s20 = sshll.u32 %s131_s19, 4  ;;  %v37_v2 = vld [vmem:[#allocation5] sm:$0x3]  ;;  %s51_s20 = int_to_ptr.vmem [resolvable:$true] %s50_s20 }
  0x1b   :  { %vm41_vm0 = vcmp.lt.s32.totalorder %v39_v0, 256  ;;  %v38_v3 = vmul.f32 %v37_v2, %v36_v1  ;;  %s103_s0 = scalar_lea.vmem %s51_s20, 32  ;;  %p108_p11 = scmp.lt.s32.totalorder %s51_s20, %s51_s20 }
  0x1c   :  { %p104_p10 = scmp.ne.s32.totalorder %s51_s20, %s103_s0  ;;  %p109_p12 = scmp.lt.s32.totalorder %s103_s0, %s103_s0 }
  0x1d   :  { %43 = vst.msk [vmem:[#allocation7] sm:$0x3] %vm41_vm0, %v38_v3 }
  0x1e   :  { %p110_p13 = por %p109_p12, %p108_p11 }
  0x20   :  { %p111_p0 = pnand %p110_p13, %p104_p10 }
  0x22   :  { %114 = shalt.err (!%p111_p0)
}
  0x23   :  { %53 = dma.vmem_to_hbm [thread:$0]  %s51_s20, 32, %s158_s2, [#allocation4]  }
  0x24   :  { %127 = dma.done.wait [#allocation4], 32  }
  0x25   :  { %128 = vsyncadd [#allocation4], 4294967264 }
  0x26   :  { %57 = vsyncpa [#allocation3], 1 }
  0x27   :  { %58 = vsyncpa [#allocation6], 1 }
  0x28   :  { %59 = vsyncpa [#allocation4], 1 }

</bundles_post_ra>
